<compile_context>
chip_gen: v5e
topology: v5e:2x2
jax: 0.10.0
libtpu: 0.0.40
codegen_flags: <defaults>
</compile_context>

<pallas_src>
import jax
import jax.numpy as jnp
from jax.experimental import pallas as pl
from jax.experimental.pallas import tpu as pltpu

_LANE = 128  # TPU lane width: output columns are padded to a multiple of this.


def _linear_relu_kernel(x_ref, w_ref, b_ref, o_ref):
    # relu(x @ w + b): f32 accumulation on the MXU, bias+ReLU epilogue on the
    # VPU (all-f32 epilogue, so it is correct on v5e's no-bf16 VPU too).
    acc = jnp.dot(x_ref[...], w_ref[...], preferred_element_type=jnp.float32)
    o_ref[...] = jnp.maximum(acc + b_ref[...], 0.0).astype(o_ref.dtype)


def linear_relu(x, w, b, *, tm=4096):
    """relu(x @ w + b).

    x: (M, K) activations; w: (K, N) pre-transposed, lane-dense-padded weight
    (N % 128 == 0); b: (1, N) bias.  Rows of x are tiled over a 1-D 'parallel'
    grid; tm is clamped to M so small batches run as a single full-array block
    with no padding copies, and Pallas handles a partial trailing block for
    large M.
    """
    M, K = x.shape
    Kw, N = w.shape
    assert K == Kw and b.shape == (1, N)
    assert N % _LANE == 0, "pad weight/bias output columns to a multiple of 128 at init"

    tm_eff = M if M <= tm else tm       # clamp; tm=4096 is already 8-aligned
    grid = (pl.cdiv(M, tm_eff),)

    cost = pl.CostEstimate(
        flops=2 * M * K * N,
        transcendentals=0,
        bytes_accessed=4 * (M * K + K * N + N + M * N),
    )

    return pl.pallas_call(
        _linear_relu_kernel,
        out_shape=jax.ShapeDtypeStruct((M, N), jnp.float32),
        grid_spec=pltpu.PrefetchScalarGridSpec(
            num_scalar_prefetch=0,
            grid=grid,
            in_specs=[
                pl.BlockSpec((tm_eff, K), lambda i: (i, 0)),   # row tile of x
                pl.BlockSpec((K, N), lambda i: (0, 0)),        # whole weight, VMEM-resident
                pl.BlockSpec((1, N), lambda i: (0, 0)),        # bias row
            ],
            out_specs=pl.BlockSpec((tm_eff, N), lambda i: (i, 0)),  # lane-dense (N % 128 == 0)
        ),
        compiler_params=pltpu.CompilerParams(
            dimension_semantics=("parallel",)),
        cost_estimate=cost,
    )(x, w, b)


def init_params(key, num_wps_input, feature_dim):
    """Matches nn.Linear's default init (uniform +-1/sqrt(fan_in)).

    The weight is stored already transposed to (in, out) and zero-padded to a
    lane-dense multiple of 128 output columns; the bias is stored as (1, N_pad)
    with zero padding.  Both transforms happen once at init, so the forward
    pass performs no transpose / reshape / pad copies.
    """
    in_dim = 2 * num_wps_input
    n_pad = _LANE * pl.cdiv(feature_dim, _LANE)
    bound = 1.0 / float(in_dim) ** 0.5
    kw, kb = jax.random.split(key)
    w_t = jax.random.uniform(kw, (in_dim, feature_dim), jnp.float32, -bound, bound)
    b = jax.random.uniform(kb, (feature_dim,), jnp.float32, -bound, bound)

    w_t_pad = jnp.zeros((in_dim, n_pad), jnp.float32).at[:, :feature_dim].set(w_t)
    b_pad = jnp.zeros((1, n_pad), jnp.float32).at[0, :feature_dim].set(b)
    return {"fc_w_t": w_t_pad, "fc_b": b_pad, "feature_dim": feature_dim}


def waypoints_encoder_forward(params, x):
    """x: (B, 2 * num_wps_input) float32 waypoint features.

    Equivalent to WayPointsEncoder.forward: relu(fc(x)).  The kernel writes a
    lane-dense padded slab; the zero-padded extra columns are sliced off here
    (their bias entries are exactly 0, so the kept columns are unchanged).
    """
    out_pad = linear_relu(x, params["fc_w_t"], params["fc_b"])
    return out_pad[:, : params["feature_dim"]]


if __name__ == "__main__":
    key = jax.random.PRNGKey(0)
    k_params, k_x = jax.random.split(key)

    num_wps_input = 8            # -> input dim = 2 * 8 = 16
    feature_dim = 32
    batch = 2

    params = init_params(k_params, num_wps_input, feature_dim)
    x = jax.random.normal(k_x, (batch, 2 * num_wps_input), jnp.float32)

    out = waypoints_encoder_forward(params, x)
    out = jax.block_until_ready(out)

    # Pure-JAX reference for correctness (uses the un-padded slice of the
    # stored weight/bias, i.e. exactly the nn.Linear parameters).
    w_ref = params["fc_w_t"][:, :feature_dim]
    b_ref = params["fc_b"][0, :feature_dim]
    ref = jnp.maximum(x @ w_ref + b_ref, 0.0)

    assert out.shape == (batch, feature_dim), out.shape
    assert out.dtype == jnp.float32
    assert bool(jnp.all(out >= 0.0))                     # final ReLU
    assert bool(jnp.allclose(out, ref, atol=1e-5, rtol=1e-5))
    print("KERNEL_OK")
</pallas_src>

<mosaic_0001>
module attributes {stable_mosaic.version = 11 : i64} {
  func.func @_linear_relu_kernel(%arg0: i32, %arg1: memref<2x16xf32, #tpu.memory_space<vmem>>, %arg2: memref<16x128xf32, #tpu.memory_space<vmem>>, %arg3: memref<1x128xf32, #tpu.memory_space<vmem>>, %arg4: memref<2x128xf32, #tpu.memory_space<vmem>>) attributes {dimension_semantics = [#tpu.dimension_semantics<parallel>], iteration_bounds = array<i64: 1>, scalar_prefetch = 0 : i64, scratch_operands = 0 : i64, tpu.core_type = #tpu.core_type<tc>, window_params = [{transform_indices = @transform_0, window_bounds = array<i64: 2, 16>}, {pipeline_mode = #tpu.pipeline_mode<synchronous>, transform_indices = @transform_1, window_bounds = array<i64: 16, 128>}, {pipeline_mode = #tpu.pipeline_mode<synchronous>, transform_indices = @transform_2, window_bounds = array<i64: 1, 128>}, {transform_indices = @transform_3, window_bounds = array<i64: 2, 128>}]} {
    %c0 = arith.constant 0 : index
    %c0_0 = arith.constant 0 : index
    %0 = vector.load %arg1[%c0, %c0_0] : memref<2x16xf32, #tpu.memory_space<vmem>>, vector<2x16xf32>
    %c0_1 = arith.constant 0 : index
    %c0_2 = arith.constant 0 : index
    %1 = vector.load %arg2[%c0_1, %c0_2] : memref<16x128xf32, #tpu.memory_space<vmem>>, vector<16x128xf32>
    %cst = arith.constant dense<0.000000e+00> : vector<2x128xf32>
    %2 = tpu.matmul %0, %1, %cst {dimension_numbers = #tpu.dot_dimension_numbers<[1], [0], [0], [1], [0, 0, 1, 1], [], []>} : vector<2x16xf32>, vector<16x128xf32>, vector<2x128xf32> -> vector<2x128xf32>
    %c0_3 = arith.constant 0 : index
    %c0_4 = arith.constant 0 : index
    %3 = vector.load %arg3[%c0_3, %c0_4] : memref<1x128xf32, #tpu.memory_space<vmem>>, vector<1x128xf32>
    %4 = vector.broadcast %3 : vector<1x128xf32> to vector<2x128xf32>
    %5 = arith.addf %2, %4 : vector<2x128xf32>
    %cst_5 = arith.constant 0.000000e+00 : f32
    %6 = vector.broadcast %cst_5 : f32 to vector<2x128xf32>
    %7 = arith.maximumf %5, %6 : vector<2x128xf32>
    %c0_6 = arith.constant 0 : index
    %c0_7 = arith.constant 0 : index
    %8 = vector.load %arg4[%c0_6, %c0_7] : memref<2x128xf32, #tpu.memory_space<vmem>>, vector<2x128xf32>
    tpu.vector_store %arg4[%c0_6, %c0_7], %7 {strides = array<i32>} : memref<2x128xf32, #tpu.memory_space<vmem>>, vector<2x128xf32>,
    return
  }
  func.func @transform_0(%arg0: i32) -> (i32, i32) {
    %c0_i32 = arith.constant 0 : i32
    %c0_i32_0 = arith.constant 0 : i32
    return %arg0, %c0_i32 : i32, i32
  }
  func.func @transform_1(%arg0: i32) -> (i32, i32) {
    %c0_i32 = arith.constant 0 : i32
    %c0_i32_0 = arith.constant 0 : i32
    %c0_i32_1 = arith.constant 0 : i32
    return %c0_i32, %c0_i32_0 : i32, i32
  }
  func.func @transform_2(%arg0: i32) -> (i32, i32) {
    %c0_i32 = arith.constant 0 : i32
    %c0_i32_0 = arith.constant 0 : i32
    %c0_i32_1 = arith.constant 0 : i32
    return %c0_i32, %c0_i32_0 : i32, i32
  }
  func.func @transform_3(%arg0: i32) -> (i32, i32) {
    %c0_i32 = arith.constant 0 : i32
    %c0_i32_0 = arith.constant 0 : i32
    return %arg0, %c0_i32 : i32, i32
  }
}

</mosaic_0001>

<bundles_post_ra>
// kernel: tpu_custom_call.1
= control target key start
LH: loop header
LB: loop body
LE: loop exit
PB: predicated region body
PF: predicated region fallthrough
CT: control target
= control target key end

     0   :  { %8 = vsyncpa [#allocation3], 0  ;;  %s218_s0 = inlined_call_operand.hbm [shape: f32[2,16], index: 0, kind: input, shape index: {}]   ;;  %s219_s1 = inlined_call_operand.hbm [shape: f32[16,128], index: 1, kind: input, shape index: {}]   ;;  %s220_s2 = inlined_call_operand.vmem [shape: f32[1,128], index: 2, kind: input, shape index: {}]   ;;  %s221_s3 = inlined_call_operand.hbm [shape: f32[2,128], index: 3, kind: output, shape index: {}]  }
   0x1   :  { %9 = vsyncpa [#allocation6], 0 }
   0x2   :  { %10 = vsyncpa [#allocation4], 0  ;;  %s16_s14 = sshll.u32 %s218_s0, 4  ;;  %s181_s15 = smov [#allocation2]   ;;  %s17_s14 = int_to_ptr.hbm [resolvable:$true] %s16_s14 }
   0x3   :  { %s18_s16 = sshll.u32 %s181_s15, 4  ;;  %s26_s19 = sshll.u32 %s219_s1, 4  ;;  %s19_s16 = int_to_ptr.vmem [resolvable:$true] %s18_s16  ;;  %s27_s19 = int_to_ptr.hbm [resolvable:$true] %s26_s19 }
   0x4   :  { %21 = dma.hbm_to_vmem [thread:$0]  %s17_s14, 32, %s19_s16, [#allocation3]  }
   0x5   :  { %s182_s20 = smov [#allocation5]   ;;  %s183_s22 = smov 128  }
   0x6   :  { %s28_s21 = sshll.u32 %s182_s20, 4  ;;  %s184_s23 = smov 8   ;;  %s29_s21 = int_to_ptr.vmem [resolvable:$true] %s28_s21 }
   0x7   :  { %34 = dma.hbm_to_vmem [thread:$0]  %s27_s19, 256, %s29_s21, [#allocation6], %s183_s22, %s183_s22, %s184_s23  }
   0x8   :  { %175 = dma.done.wait [#allocation3], 32  }
   0x9   :  { %176 = vsyncadd [#allocation3], 4294967264 }
   0xa   :  { %177 = dma.done.wait [#allocation6], 256  }
   0xb   :  { %178 = vsyncadd [#allocation6], 4294967040  ;;  %v47_v0 = vld [vmem:[#allocation5 + $0x8] sm:$0xff]  ;;  %v46_v1 = vld [vmem:[#allocation5] sm:$0xff]  ;;  %vm52_vm0 = vcmask 130048   ;;  %s185_s24 = smov [#allocation7]  }
   0xc   :  { %70 = vmatpush.msra.mxu0 %v47_v0  ;;  %v45_v2 = vld [vmem:[#allocation2] sm:$0x3]  ;;  %s83_s25 = sshll.u32 %s185_s24, 4  ;;  %s85_s28 = sshll.u32 %s221_s3, 4  ;;  %s84_s25 = int_to_ptr.vmem [resolvable:$true] %s83_s25  ;;  %s86_s28 = int_to_ptr.hbm [resolvable:$true] %s85_s28 }
   0xd   :  { %v102_v3 = vld [vmem:[%s220_s2] ss:$0 sm:$0xff] }
   0xe   :  { %71 = vmatpush.msra.mxu0 %v46_v1 }
   0xf   :  { %96 = vmatmul.msk.f32.vlgmr.msra.gmra.mxu0 %vm52_vm0, %v45_v2 }
  0x8c   :  { %v73_v4 = vpop.f32.mrf.mxu0 }
  0x8d   :  { %v74_v5 = vadd.f32 %v102_v3, %v73_v4 }
  0x8f   :  { %v76_v6 = vmax.f32 %v74_v5, 0.0 }
  0x91   :  { %77 = vst [vmem:[#allocation7] sm:$0x3] %v76_v6 }
  0x92   :  { %88 = dma.vmem_to_hbm [thread:$0]  %s84_s25, 32, %s86_s28, [#allocation4]  }
  0x93   :  { %179 = dma.done.wait [#allocation4], 32  }
  0x94   :  { %180 = vsyncadd [#allocation4], 4294967264 }
  0x95   :  { %93 = vsyncpa [#allocation3], 1 }
  0x96   :  { %94 = vsyncpa [#allocation6], 1 }
  0x97   :  { %95 = vsyncpa [#allocation4], 1 }

</bundles_post_ra>
